<compile_context>
chip_gen: v6e
topology: v6e:2x2x1
jax: 0.10.0
libtpu: 0.0.40
codegen_flags: <defaults>
</compile_context>

<pallas_src>
import functools

import jax
import jax.numpy as jnp
from jax import lax
from jax.experimental import pallas as pl
from jax.experimental.pallas import tpu as pltpu

_MASK_VAL = -1e30


# ------------------------------ in-kernel helpers ---------------------------

def _layer_norm(x, g, b, eps=1e-5):
    mean = jnp.mean(x, axis=-1, keepdims=True)
    var = jnp.mean(jnp.square(x - mean), axis=-1, keepdims=True)
    return (x - mean) * lax.rsqrt(var + eps) * g + b


def _bf16(x):
    return x.astype(jnp.bfloat16)


def _halo_pad(v, pad):
    """Zero halo along the sublane (sequence) axis, built in VMEM."""
    if pad == 0:
        return v
    z = jnp.zeros((pad, v.shape[1]), v.dtype)
    return jnp.concatenate([z, v, z], axis=0)


def _im2col(v, taps, seq_len):
    """Lane-concatenate `taps` shifted views -> (L, taps*C) for one conv matmul."""
    return jnp.concatenate([v[j:j + seq_len, :] for j in range(taps)], axis=-1)


def _compiler_params():
    return pltpu.CompilerParams(dimension_semantics=("parallel",),
                                vmem_limit_bytes=32 * 1024 * 1024)


# --------------------- fused self-attention block kernel --------------------

def _attn_block_kernel(lens_ref, x_ref, wqkv_ref, bqkv_ref, wo_ref, bo_ref,
                       ln_g_ref, ln_b_ref, o_ref, *, n_head, scale):
    length = lens_ref[pl.program_id(0)]             # SMEM scalar
    x = x_ref[0]                                    # (L, D) bf16
    L, D = x.shape
    dk = D // n_head

    # packed QKV projection: one matmul instead of three
    qkv = jnp.dot(x, wqkv_ref[...],
                  preferred_element_type=jnp.float32) + bqkv_ref[...]   # (L, 3D) f32

    key_idx = lax.broadcasted_iota(jnp.int32, (L, L), 1)
    row_idx = lax.broadcasted_iota(jnp.int32, (L, 1), 0)

    heads = []
    for h in range(n_head):                         # static loop over heads
        qh = _bf16(qkv[:, h * dk:(h + 1) * dk])
        kh = _bf16(qkv[:, D + h * dk:D + (h + 1) * dk])
        vh = _bf16(qkv[:, 2 * D + h * dk:2 * D + (h + 1) * dk])
        # contract over dk without an explicit K transpose
        s = lax.dot_general(qh, kh, (((1,), (1,)), ((), ())),
                            preferred_element_type=jnp.float32) * scale
        s = jnp.where(key_idx >= length, _MASK_VAL, s)   # key-pad mask, in-kernel
        s = s - jnp.max(s, axis=-1, keepdims=True)
        p = jnp.exp(s)
        p = p / jnp.sum(p, axis=-1, keepdims=True)       # exact softmax
        heads.append(_bf16(jnp.dot(_bf16(p), vh,
                                   preferred_element_type=jnp.float32)))
    ctx = jnp.concatenate(heads, axis=-1)           # (L, D) bf16, lane-packed heads
    # single full-D output projection (fills the MXU contraction)
    proj = jnp.dot(ctx, wo_ref[...],
                   preferred_element_type=jnp.float32) + bo_ref[...]
    y = _layer_norm(proj + x.astype(jnp.float32), ln_g_ref[...], ln_b_ref[...])
    y = y * (row_idx < length).astype(jnp.float32)  # non-pad mask, in-kernel
    o_ref[0] = _bf16(y)


def attn_block(x, lens, p, n_head):
    B, L, D = x.shape
    scale = 1.0 / float(D // n_head) ** 0.5
    kern = functools.partial(_attn_block_kernel, n_head=n_head, scale=scale)
    grid_spec = pltpu.PrefetchScalarGridSpec(
        num_scalar_prefetch=1, grid=(B,),
        in_specs=[
            pl.BlockSpec((1, L, D), lambda i, _: (i, 0, 0)),
            pl.BlockSpec((D, 3 * D), lambda i, _: (0, 0)),
            pl.BlockSpec((1, 3 * D), lambda i, _: (0, 0)),
            pl.BlockSpec((D, D), lambda i, _: (0, 0)),
            pl.BlockSpec((1, D), lambda i, _: (0, 0)),
            pl.BlockSpec((1, D), lambda i, _: (0, 0)),
            pl.BlockSpec((1, D), lambda i, _: (0, 0)),
        ],
        out_specs=pl.BlockSpec((1, L, D), lambda i, _: (i, 0, 0)),
    )
    return pl.pallas_call(
        kern,
        grid_spec=grid_spec,
        out_shape=jax.ShapeDtypeStruct((B, L, D), jnp.bfloat16),
        compiler_params=_compiler_params(),
    )(lens, x, p["wqkv"], p["bqkv"], p["wo"], p["bo"], p["ln_g"], p["ln_b"])


# ----------------------- fused conv feed-forward block ----------------------

def _ffn_block_kernel(lens_ref, x_ref, w1_ref, b1_ref, w2_ref, b2_ref,
                      ln_g_ref, ln_b_ref, o_ref, *, k1, p1, k2, p2):
    length = lens_ref[pl.program_id(0)]
    x = x_ref[0]                                    # (L, D) bf16
    L = x.shape[0]

    # conv1 (9-tap) as one im2col matmul; halo built in-kernel
    col1 = _im2col(_halo_pad(x, p1), k1, L)         # (L, k1*D) bf16
    h = jnp.dot(col1, w1_ref[...],
                preferred_element_type=jnp.float32) + b1_ref[...]
    h = jnp.maximum(h, 0.0)

    # conv2 (1-tap in FastSpeech; generalized)
    col2 = _im2col(_halo_pad(_bf16(h), p2), k2, L)  # (L, k2*d_inner) bf16
    acc = jnp.dot(col2, w2_ref[...],
                  preferred_element_type=jnp.float32) + b2_ref[...]

    y = _layer_norm(acc + x.astype(jnp.float32), ln_g_ref[...], ln_b_ref[...])
    row_idx = lax.broadcasted_iota(jnp.int32, (L, 1), 0)
    y = y * (row_idx < length).astype(jnp.float32)
    o_ref[0] = _bf16(y)


def ffn_block(x, lens, p, kernels, paddings):
    B, L, D = x.shape
    k1, k2 = kernels
    p1, p2 = paddings
    d_inner = p["w1"].shape[-1]
    kern = functools.partial(_ffn_block_kernel, k1=k1, p1=p1, k2=k2, p2=p2)
    grid_spec = pltpu.PrefetchScalarGridSpec(
        num_scalar_prefetch=1, grid=(B,),
        in_specs=[
            pl.BlockSpec((1, L, D), lambda i, _: (i, 0, 0)),
            pl.BlockSpec((k1 * D, d_inner), lambda i, _: (0, 0)),
            pl.BlockSpec((1, d_inner), lambda i, _: (0, 0)),
            pl.BlockSpec((k2 * d_inner, D), lambda i, _: (0, 0)),
            pl.BlockSpec((1, D), lambda i, _: (0, 0)),
            pl.BlockSpec((1, D), lambda i, _: (0, 0)),
            pl.BlockSpec((1, D), lambda i, _: (0, 0)),
        ],
        out_specs=pl.BlockSpec((1, L, D), lambda i, _: (i, 0, 0)),
    )
    return pl.pallas_call(
        kern,
        grid_spec=grid_spec,
        out_shape=jax.ShapeDtypeStruct((B, L, D), jnp.bfloat16),
        compiler_params=_compiler_params(),
    )(lens, x, p["w1"], p["b1"], p["w2"], p["b2"], p["ln_g"], p["ln_b"])


# ----------------------------- duration predictor ---------------------------
# Single fused kernel: Conv -> ReLU -> LN -> Conv -> ReLU -> LN -> Linear -> ReLU.
# Output is lane-dense (one (1, L) row per batch item).

def _dp_kernel(x_ref, c1_w_ref, c1_b_ref, ln1_g_ref, ln1_b_ref,
               c2_w_ref, c2_b_ref, ln2_g_ref, ln2_b_ref,
               lin_w_ref, lin_b_ref, o_ref, *, k, pad):
    x = x_ref[0]                                    # (L, D) bf16
    L = x.shape[0]

    col1 = _im2col(_halo_pad(x, pad), k, L)
    h = jnp.maximum(jnp.dot(col1, c1_w_ref[...],
                            preferred_element_type=jnp.float32) + c1_b_ref[...], 0.0)
    h = _layer_norm(h, ln1_g_ref[...], ln1_b_ref[...])       # Conv -> ReLU -> LN

    col2 = _im2col(_halo_pad(_bf16(h), pad), k, L)
    h2 = jnp.maximum(jnp.dot(col2, c2_w_ref[...],
                             preferred_element_type=jnp.float32) + c2_b_ref[...], 0.0)
    h2 = _layer_norm(h2, ln2_g_ref[...], ln2_b_ref[...])

    # final linear + ReLU; contract F against F so the result lands lane-dense (1, L)
    dur = lax.dot_general(lin_w_ref[...], _bf16(h2), (((1,), (1,)), ((), ())),
                          preferred_element_type=jnp.float32) + lin_b_ref[...]
    o_ref[0] = jnp.maximum(dur, 0.0)


def duration_predictor(x, p, cfg):
    B, L, D = x.shape
    F_ = cfg["duration_predictor_filter_size"]
    k = cfg["duration_predictor_kernel_size"]
    pad = (k - 1) // 2
    kern = functools.partial(_dp_kernel, k=k, pad=pad)
    out = pl.pallas_call(
        kern,
        grid=(B,),
        in_specs=[
            pl.BlockSpec((1, L, D), lambda i: (i, 0, 0)),
            pl.BlockSpec((k * D, F_), lambda i: (0, 0)),
            pl.BlockSpec((1, F_), lambda i: (0, 0)),
            pl.BlockSpec((1, F_), lambda i: (0, 0)),
            pl.BlockSpec((1, F_), lambda i: (0, 0)),
            pl.BlockSpec((k * F_, F_), lambda i: (0, 0)),
            pl.BlockSpec((1, F_), lambda i: (0, 0)),
            pl.BlockSpec((1, F_), lambda i: (0, 0)),
            pl.BlockSpec((1, F_), lambda i: (0, 0)),
            pl.BlockSpec((1, F_), lambda i: (0, 0)),
            pl.BlockSpec((1, 1), lambda i: (0, 0)),
        ],
        out_specs=pl.BlockSpec((1, 1, L), lambda i: (i, 0, 0)),
        out_shape=jax.ShapeDtypeStruct((B, 1, L), jnp.float32),
        compiler_params=_compiler_params(),
    )(x, p["c1_w"], p["c1_b"], p["ln1_g"], p["ln1_b"],
      p["c2_w"], p["c2_b"], p["ln2_g"], p["ln2_b"], p["lin_w"], p["lin_b"])
    return out[:, 0, :]


# --------------------------- length regulator (train) ------------------------
# Alignment one-hot is built in-kernel from (starts, cumsum) vectors -> no
# (B, T, L) HBM intermediate; the bf16 one-hot matmul is an exact row selection.
# TODO(synk): a scalar-prefetch row gather would make this O(T*D) instead of
#             O(T*L*D) MXU work at very long mel lengths.

def _expand_kernel(starts_ref, cum_ref, x_ref, o_ref):
    starts = starts_ref[0]                          # (1, L) int32
    cum = cum_ref[0]                                # (1, L) int32
    T = o_ref.shape[1]
    L = starts.shape[1]
    t = lax.broadcasted_iota(jnp.int32, (T, L), 0)
    align = jnp.logical_and(t >= starts, t < cum)
    align = align.astype(jnp.float32).astype(jnp.bfloat16)
    o_ref[0] = jnp.dot(align, x_ref[0],
                       preferred_element_type=jnp.float32).astype(jnp.bfloat16)


def length_regulate(x, durations, mel_max_length):
    B, L, D = x.shape
    cum = jnp.cumsum(durations, axis=1).astype(jnp.int32)
    starts = (cum - durations).astype(jnp.int32)
    starts = starts[:, None, :]                     # (B, 1, L) lane-dense
    cum = cum[:, None, :]
    return pl.pallas_call(
        _expand_kernel,
        grid=(B,),
        in_specs=[
            pl.BlockSpec((1, 1, L), lambda i: (i, 0, 0)),
            pl.BlockSpec((1, 1, L), lambda i: (i, 0, 0)),
            pl.BlockSpec((1, L, D), lambda i: (i, 0, 0)),
        ],
        out_specs=pl.BlockSpec((1, mel_max_length, D), lambda i: (i, 0, 0)),
        out_shape=jax.ShapeDtypeStruct((B, mel_max_length, D), jnp.bfloat16),
        compiler_params=_compiler_params(),
    )(starts, cum, x)


# --------------------------- mel linear with keep-mask -----------------------
# Reference order is mask_tensor() BEFORE mel_linear(), so masked frames equal
# the bias after the projection; we match that order exactly.

def _mel_kernel(lens_ref, x_ref, w_ref, b_ref, o_ref):
    length = lens_ref[pl.program_id(0)]
    x = x_ref[0]                                    # (T, D) bf16
    T = x.shape[0]
    row_idx = lax.broadcasted_iota(jnp.int32, (T, 1), 0)
    keep = (row_idx < length).astype(jnp.float32)
    xm = _bf16(x.astype(jnp.float32) * keep)
    o_ref[0] = jnp.dot(xm, w_ref[...],
                       preferred_element_type=jnp.float32) + b_ref[...]


def mel_linear_masked(x, lens, w, b):
    B, T, D = x.shape
    M = w.shape[-1]
    grid_spec = pltpu.PrefetchScalarGridSpec(
        num_scalar_prefetch=1, grid=(B,),
        in_specs=[
            pl.BlockSpec((1, T, D), lambda i, _: (i, 0, 0)),
            pl.BlockSpec((D, M), lambda i, _: (0, 0)),
            pl.BlockSpec((1, M), lambda i, _: (0, 0)),
        ],
        out_specs=pl.BlockSpec((1, T, M), lambda i, _: (i, 0, 0)),
    )
    return pl.pallas_call(
        _mel_kernel,
        grid_spec=grid_spec,
        out_shape=jax.ShapeDtypeStruct((B, T, M), jnp.float32),
        compiler_params=_compiler_params(),
    )(lens, x, w, b)


# ----------------------------- model (glue) --------------------------------

def fft_block(x, lens, layer, n_head, kernels, paddings):
    x = attn_block(x, lens, layer["attn"], n_head)
    x = ffn_block(x, lens, layer["ffn"], kernels, paddings)
    return x


def encoder_forward(src_seq, src_pos, params, cfg):
    lens = jnp.sum(src_seq != cfg["pad_idx"], axis=-1).astype(jnp.int32)
    x = params["src_word_emb"][src_seq] + params["enc_pos_emb"][src_pos]
    x = x.astype(jnp.bfloat16)
    for layer in params["enc_layers"]:
        x = fft_block(x, lens, layer, cfg["encoder_n_head"],
                      cfg["fft_conv1d_kernel"], cfg["fft_conv1d_padding"])
    return x, lens


def decoder_forward(enc_seq, enc_pos, params, cfg):
    lens = jnp.sum(enc_pos != cfg["pad_idx"], axis=-1).astype(jnp.int32)
    x = enc_seq.astype(jnp.float32) + params["dec_pos_emb"][enc_pos]
    x = x.astype(jnp.bfloat16)
    for layer in params["dec_layers"]:
        x = fft_block(x, lens, layer, cfg["decoder_n_head"],
                      cfg["fft_conv1d_kernel"], cfg["fft_conv1d_padding"])
    return x


def fastspeech_forward(params, cfg, src_seq, src_pos, mel_pos, mel_max_length,
                       length_target, alpha=1.0):
    x, _ = encoder_forward(src_seq, src_pos, params, cfg)
    dp_out = duration_predictor(x, params["dp"], cfg)
    output = length_regulate(x, length_target, mel_max_length)
    output = decoder_forward(output, mel_pos, params, cfg)
    mel_lens = jnp.max(mel_pos, axis=-1).astype(jnp.int32)
    mel = mel_linear_masked(output, mel_lens, params["mel_w"], params["mel_b"])
    return mel, dp_out


# ----------------------------- parameter init ------------------------------

def init_params(key, cfg):
    kit = iter(jax.random.split(key, 256))

    def nrm(shape, scale=0.02):
        return (scale * jax.random.normal(next(kit), shape)).astype(jnp.float32)

    def mxu(shape, scale=0.02):
        # matmul operands stored in bf16 (f32 accumulation happens in-kernel)
        return nrm(shape, scale).astype(jnp.bfloat16)

    D = cfg["encoder_dim"]
    params = {}
    params["src_word_emb"] = nrm((cfg["vocab_size"], D), 0.1).at[cfg["pad_idx"]].set(0.0)
    params["enc_pos_emb"] = nrm((cfg["max_seq_len"] + 1, D), 0.1).at[cfg["pad_idx"]].set(0.0)
    params["dec_pos_emb"] = nrm((cfg["max_seq_len"] + 1, D), 0.1).at[cfg["pad_idx"]].set(0.0)

    def fft_layer(d_model, d_inner, kernels):
        return {
            "attn": {
                "wqkv": mxu((d_model, 3 * d_model)),          # packed Q|K|V
                "bqkv": jnp.zeros((1, 3 * d_model), jnp.float32),
                "wo": mxu((d_model, d_model)),
                "bo": jnp.zeros((1, d_model), jnp.float32),
                "ln_g": jnp.ones((1, d_model), jnp.float32),
                "ln_b": jnp.zeros((1, d_model), jnp.float32),
            },
            "ffn": {
                # conv weights pre-flattened to (k*C_in, C_out) for im2col matmul
                "w1": mxu((kernels[0] * d_model, d_inner)),
                "b1": jnp.zeros((1, d_inner), jnp.float32),
                "w2": mxu((kernels[1] * d_inner, d_model)),
                "b2": jnp.zeros((1, d_model), jnp.float32),
                "ln_g": jnp.ones((1, d_model), jnp.float32),
                "ln_b": jnp.zeros((1, d_model), jnp.float32),
            },
        }

    params["enc_layers"] = [
        fft_layer(D, cfg["encoder_conv1d_filter_size"], cfg["fft_conv1d_kernel"])
        for _ in range(cfg["encoder_n_layer"])]
    params["dec_layers"] = [
        fft_layer(D, cfg["decoder_conv1d_filter_size"], cfg["fft_conv1d_kernel"])
        for _ in range(cfg["decoder_n_layer"])]

    F_ = cfg["duration_predictor_filter_size"]
    Kd = cfg["duration_predictor_kernel_size"]
    params["dp"] = {
        "c1_w": mxu((Kd * D, F_)), "c1_b": jnp.zeros((1, F_), jnp.float32),
        "ln1_g": jnp.ones((1, F_), jnp.float32), "ln1_b": jnp.zeros((1, F_), jnp.float32),
        "c2_w": mxu((Kd * F_, F_)), "c2_b": jnp.zeros((1, F_), jnp.float32),
        "ln2_g": jnp.ones((1, F_), jnp.float32), "ln2_b": jnp.zeros((1, F_), jnp.float32),
        "lin_w": mxu((1, F_)), "lin_b": jnp.zeros((1, 1), jnp.float32),
    }
    params["mel_w"] = mxu((cfg["decoder_dim"], cfg["num_mels"]))
    params["mel_b"] = jnp.zeros((1, cfg["num_mels"]), jnp.float32)
    return params


# --------------------------------- main -------------------------------------

if __name__ == "__main__":
    cfg = dict(
        max_seq_len=32, encoder_n_layer=1, decoder_n_layer=1, vocab_size=24,
        encoder_dim=32, decoder_dim=32, pad_idx=0,
        encoder_conv1d_filter_size=64, encoder_n_head=2,
        decoder_conv1d_filter_size=64, decoder_n_head=2,
        num_mels=16, dropout=0.0,
        fft_conv1d_kernel=[9, 1], fft_conv1d_padding=[4, 0],
        duration_predictor_filter_size=32, duration_predictor_kernel_size=3,
    )

    key = jax.random.PRNGKey(0)
    params = init_params(key, cfg)

    B, L, T = 2, 8, 16
    src_seq = jnp.array([[3, 5, 7, 2, 4, 0, 0, 0],
                         [6, 1, 8, 9, 2, 3, 5, 0]], dtype=jnp.int32)
    src_pos = jnp.array([[1, 2, 3, 4, 5, 0, 0, 0],
                         [1, 2, 3, 4, 5, 6, 7, 0]], dtype=jnp.int32)
    length_target = jnp.array([[3, 2, 4, 3, 4, 0, 0, 0],
                               [2, 2, 2, 2, 2, 2, 2, 0]], dtype=jnp.int32)
    mel_pos = jnp.array(
        [list(range(1, T + 1)),
         list(range(1, 15)) + [0, 0]], dtype=jnp.int32)

    mel_out, dp_out = fastspeech_forward(
        params, cfg, src_seq, src_pos, mel_pos, T, length_target, alpha=1.0)
    jax.block_until_ready(mel_out)
    jax.block_until_ready(dp_out)

    assert mel_out.shape == (B, T, cfg["num_mels"])
    assert dp_out.shape == (B, L)
    print("KERNEL_OK")
</pallas_src>

<mosaic_0001>
module attributes {stable_mosaic.version = 11 : i64} {
  func.func @_attn_block_kernel(%arg0: i32, %arg1: memref<2xi32, #tpu.memory_space<smem>>, %arg2: memref<1x8x32xbf16, #tpu.memory_space<vmem>>, %arg3: memref<32x96xbf16, #tpu.memory_space<vmem>>, %arg4: memref<1x96xf32, #tpu.memory_space<vmem>>, %arg5: memref<32x32xbf16, #tpu.memory_space<vmem>>, %arg6: memref<1x32xf32, #tpu.memory_space<vmem>>, %arg7: memref<1x32xf32, #tpu.memory_space<vmem>>, %arg8: memref<1x32xf32, #tpu.memory_space<vmem>>, %arg9: memref<1x8x32xbf16, #tpu.memory_space<vmem>>) attributes {dimension_semantics = [#tpu.dimension_semantics<parallel>], iteration_bounds = array<i64: 2>, scalar_prefetch = 1 : i64, scratch_operands = 0 : i64, tpu.core_type = #tpu.core_type<tc>, window_params = [{transform_indices = @transform_0, window_bounds = array<i64: 1, 8, 32>}, {pipeline_mode = #tpu.pipeline_mode<synchronous>, transform_indices = @transform_1, window_bounds = array<i64: 32, 96>}, {pipeline_mode = #tpu.pipeline_mode<synchronous>, transform_indices = @transform_2, window_bounds = array<i64: 1, 96>}, {pipeline_mode = #tpu.pipeline_mode<synchronous>, transform_indices = @transform_3, window_bounds = array<i64: 32, 32>}, {pipeline_mode = #tpu.pipeline_mode<synchronous>, transform_indices = @transform_4, window_bounds = array<i64: 1, 32>}, {pipeline_mode = #tpu.pipeline_mode<synchronous>, transform_indices = @transform_5, window_bounds = array<i64: 1, 32>}, {pipeline_mode = #tpu.pipeline_mode<synchronous>, transform_indices = @transform_6, window_bounds = array<i64: 1, 32>}, {transform_indices = @transform_7, window_bounds = array<i64: 1, 8, 32>}]} {
    %0 = arith.index_cast %arg0 : i32 to index
    %1 = memref.load %arg1[%0] : memref<2xi32, #tpu.memory_space<smem>>
    %c0 = arith.constant 0 : index
    %c0_0 = arith.constant 0 : index
    %c0_1 = arith.constant 0 : index
    %2 = vector.load %arg2[%c0, %c0_0, %c0_1] : memref<1x8x32xbf16, #tpu.memory_space<vmem>>, vector<1x8x32xbf16>
    %3 = vector.shape_cast %2 : vector<1x8x32xbf16> to vector<8x32xbf16>
    %c0_2 = arith.constant 0 : index
    %c0_3 = arith.constant 0 : index
    %4 = vector.load %arg3[%c0_2, %c0_3] : memref<32x96xbf16, #tpu.memory_space<vmem>>, vector<32x96xbf16>
    %cst = arith.constant dense<0.000000e+00> : vector<8x96xf32>
    %5 = tpu.matmul %3, %4, %cst {dimension_numbers = #tpu.dot_dimension_numbers<[1], [0], [0], [1], [0, 0, 1, 1], [], []>} : vector<8x32xbf16>, vector<32x96xbf16>, vector<8x96xf32> -> vector<8x96xf32>
    %c0_4 = arith.constant 0 : index
    %c0_5 = arith.constant 0 : index
    %6 = vector.load %arg4[%c0_4, %c0_5] : memref<1x96xf32, #tpu.memory_space<vmem>>, vector<1x96xf32>
    %7 = vector.broadcast %6 : vector<1x96xf32> to vector<8x96xf32>
    %8 = arith.addf %5, %7 : vector<8x96xf32>
    %9 = tpu.iota {dimensions = array<i32: 1>} : vector<8x8xi32>
    %10 = tpu.iota {dimensions = array<i32: 0>} : vector<8x1xi32>
    %11 = vector.extract_strided_slice %8 {offsets = [0, 0], sizes = [8, 16], strides = [1, 1]} : vector<8x96xf32> to vector<8x16xf32>
    %12 = arith.truncf %11 : vector<8x16xf32> to vector<8x16xbf16>
    %13 = vector.extract_strided_slice %8 {offsets = [0, 32], sizes = [8, 16], strides = [1, 1]} : vector<8x96xf32> to vector<8x16xf32>
    %14 = arith.truncf %13 : vector<8x16xf32> to vector<8x16xbf16>
    %15 = vector.extract_strided_slice %8 {offsets = [0, 64], sizes = [8, 16], strides = [1, 1]} : vector<8x96xf32> to vector<8x16xf32>
    %16 = arith.truncf %15 : vector<8x16xf32> to vector<8x16xbf16>
    %cst_6 = arith.constant dense<0.000000e+00> : vector<8x8xf32>
    %17 = tpu.matmul %12, %14, %cst_6 {dimension_numbers = #tpu.dot_dimension_numbers<[1], [1], [0], [0], [0, 0, 1, 0], [], []>} : vector<8x16xbf16>, vector<8x16xbf16>, vector<8x8xf32> -> vector<8x8xf32>
    %cst_7 = arith.constant 2.500000e-01 : f32
    %18 = vector.broadcast %cst_7 : f32 to vector<8x8xf32>
    %19 = arith.mulf %17, %18 : vector<8x8xf32>
    %20 = vector.broadcast %1 : i32 to vector<8x8xi32>
    %21 = arith.cmpi sge, %9, %20 : vector<8x8xi32>
    %cst_8 = arith.constant -1.000000e+30 : f32
    %22 = vector.broadcast %cst_8 : f32 to vector<8x8xf32>
    %23 = arith.select %21, %22, %19 : vector<8x8xi1>, vector<8x8xf32>
    %cst_9 = arith.constant dense<0xFF800000> : vector<8xf32>
    %24 = vector.multi_reduction <maximumf>, %23, %cst_9 [1] : vector<8x8xf32> to vector<8xf32>
    %25 = vector.shape_cast %24 : vector<8xf32> to vector<8x1xf32>
    %26 = vector.broadcast %25 : vector<8x1xf32> to vector<8x8xf32>
    %27 = arith.subf %23, %26 : vector<8x8xf32>
    %28 = math.exp %27 : vector<8x8xf32>
    %cst_10 = arith.constant dense<0.000000e+00> : vector<8xf32>
    %29 = vector.multi_reduction <add>, %28, %cst_10 [1] : vector<8x8xf32> to vector<8xf32>
    %30 = vector.shape_cast %29 : vector<8xf32> to vector<8x1xf32>
    %31 = vector.broadcast %30 : vector<8x1xf32> to vector<8x8xf32>
    %32 = arith.divf %28, %31 : vector<8x8xf32>
    %33 = arith.truncf %32 : vector<8x8xf32> to vector<8x8xbf16>
    %cst_11 = arith.constant dense<0.000000e+00> : vector<8x16xf32>
    %34 = tpu.matmul %33, %16, %cst_11 {dimension_numbers = #tpu.dot_dimension_numbers<[1], [0], [0], [1], [0, 0, 1, 1], [], []>} : vector<8x8xbf16>, vector<8x16xbf16>, vector<8x16xf32> -> vector<8x16xf32>
    %35 = arith.truncf %34 : vector<8x16xf32> to vector<8x16xbf16>
    %36 = vector.extract_strided_slice %8 {offsets = [0, 16], sizes = [8, 16], strides = [1, 1]} : vector<8x96xf32> to vector<8x16xf32>
    %37 = arith.truncf %36 : vector<8x16xf32> to vector<8x16xbf16>
    %38 = vector.extract_strided_slice %8 {offsets = [0, 48], sizes = [8, 16], strides = [1, 1]} : vector<8x96xf32> to vector<8x16xf32>
    %39 = arith.truncf %38 : vector<8x16xf32> to vector<8x16xbf16>
    %40 = vector.extract_strided_slice %8 {offsets = [0, 80], sizes = [8, 16], strides = [1, 1]} : vector<8x96xf32> to vector<8x16xf32>
    %41 = arith.truncf %40 : vector<8x16xf32> to vector<8x16xbf16>
    %cst_12 = arith.constant dense<0.000000e+00> : vector<8x8xf32>
    %42 = tpu.matmul %37, %39, %cst_12 {dimension_numbers = #tpu.dot_dimension_numbers<[1], [1], [0], [0], [0, 0, 1, 0], [], []>} : vector<8x16xbf16>, vector<8x16xbf16>, vector<8x8xf32> -> vector<8x8xf32>
    %cst_13 = arith.constant 2.500000e-01 : f32
    %43 = vector.broadcast %cst_13 : f32 to vector<8x8xf32>
    %44 = arith.mulf %42, %43 : vector<8x8xf32>
    %45 = vector.broadcast %1 : i32 to vector<8x8xi32>
    %46 = arith.cmpi sge, %9, %45 : vector<8x8xi32>
    %cst_14 = arith.constant -1.000000e+30 : f32
    %47 = vector.broadcast %cst_14 : f32 to vector<8x8xf32>
    %48 = arith.select %46, %47, %44 : vector<8x8xi1>, vector<8x8xf32>
    %cst_15 = arith.constant dense<0xFF800000> : vector<8xf32>
    %49 = vector.multi_reduction <maximumf>, %48, %cst_15 [1] : vector<8x8xf32> to vector<8xf32>
    %50 = vector.shape_cast %49 : vector<8xf32> to vector<8x1xf32>
    %51 = vector.broadcast %50 : vector<8x1xf32> to vector<8x8xf32>
    %52 = arith.subf %48, %51 : vector<8x8xf32>
    %53 = math.exp %52 : vector<8x8xf32>
    %cst_16 = arith.constant dense<0.000000e+00> : vector<8xf32>
    %54 = vector.multi_reduction <add>, %53, %cst_16 [1] : vector<8x8xf32> to vector<8xf32>
    %55 = vector.shape_cast %54 : vector<8xf32> to vector<8x1xf32>
    %56 = vector.broadcast %55 : vector<8x1xf32> to vector<8x8xf32>
    %57 = arith.divf %53, %56 : vector<8x8xf32>
    %58 = arith.truncf %57 : vector<8x8xf32> to vector<8x8xbf16>
    %cst_17 = arith.constant dense<0.000000e+00> : vector<8x16xf32>
    %59 = tpu.matmul %58, %41, %cst_17 {dimension_numbers = #tpu.dot_dimension_numbers<[1], [0], [0], [1], [0, 0, 1, 1], [], []>} : vector<8x8xbf16>, vector<8x16xbf16>, vector<8x16xf32> -> vector<8x16xf32>
    %60 = arith.truncf %59 : vector<8x16xf32> to vector<8x16xbf16>
    %61 = tpu.concatenate %35, %60 in 1 : vector<8x16xbf16>, vector<8x16xbf16> -> vector<8x32xbf16>
    %c0_18 = arith.constant 0 : index
    %c0_19 = arith.constant 0 : index
    %62 = vector.load %arg5[%c0_18, %c0_19] : memref<32x32xbf16, #tpu.memory_space<vmem>>, vector<32x32xbf16>
    %cst_20 = arith.constant dense<0.000000e+00> : vector<8x32xf32>
    %63 = tpu.matmul %61, %62, %cst_20 {dimension_numbers = #tpu.dot_dimension_numbers<[1], [0], [0], [1], [0, 0, 1, 1], [], []>} : vector<8x32xbf16>, vector<32x32xbf16>, vector<8x32xf32> -> vector<8x32xf32>
    %c0_21 = arith.constant 0 : index
    %c0_22 = arith.constant 0 : index
    %64 = vector.load %arg6[%c0_21, %c0_22] : memref<1x32xf32, #tpu.memory_space<vmem>>, vector<1x32xf32>
    %65 = vector.broadcast %64 : vector<1x32xf32> to vector<8x32xf32>
    %66 = arith.addf %63, %65 : vector<8x32xf32>
    %67 = arith.extf %3 : vector<8x32xbf16> to vector<8x32xf32>
    %68 = arith.addf %66, %67 : vector<8x32xf32>
    %c0_23 = arith.constant 0 : index
    %c0_24 = arith.constant 0 : index
    %69 = vector.load %arg7[%c0_23, %c0_24] : memref<1x32xf32, #tpu.memory_space<vmem>>, vector<1x32xf32>
    %c0_25 = arith.constant 0 : index
    %c0_26 = arith.constant 0 : index
    %70 = vector.load %arg8[%c0_25, %c0_26] : memref<1x32xf32, #tpu.memory_space<vmem>>, vector<1x32xf32>
    %cst_27 = arith.constant dense<0.000000e+00> : vector<8xf32>
    %71 = vector.multi_reduction <add>, %68, %cst_27 [1] : vector<8x32xf32> to vector<8xf32>
    %72 = vector.shape_cast %71 : vector<8xf32> to vector<8x1xf32>
    %cst_28 = arith.constant 3.200000e+01 : f32
    %73 = vector.broadcast %cst_28 : f32 to vector<8x1xf32>
    %74 = arith.divf %72, %73 : vector<8x1xf32>
    %75 = vector.broadcast %74 : vector<8x1xf32> to vector<8x32xf32>
    %76 = arith.subf %68, %75 : vector<8x32xf32>
    %77 = arith.mulf %76, %76 : vector<8x32xf32>
    %cst_29 = arith.constant dense<0.000000e+00> : vector<8xf32>
    %78 = vector.multi_reduction <add>, %77, %cst_29 [1] : vector<8x32xf32> to vector<8xf32>
    %79 = vector.shape_cast %78 : vector<8xf32> to vector<8x1xf32>
    %cst_30 = arith.constant 3.200000e+01 : f32
    %80 = vector.broadcast %cst_30 : f32 to vector<8x1xf32>
    %81 = arith.divf %79, %80 : vector<8x1xf32>
    %82 = vector.broadcast %74 : vector<8x1xf32> to vector<8x32xf32>
    %83 = arith.subf %68, %82 : vector<8x32xf32>
    %cst_31 = arith.constant 9.99999974E-6 : f32
    %84 = vector.broadcast %cst_31 : f32 to vector<8x1xf32>
    %85 = arith.addf %81, %84 : vector<8x1xf32>
    %86 = math.rsqrt %85 : vector<8x1xf32>
    %87 = vector.broadcast %86 : vector<8x1xf32> to vector<8x32xf32>
    %88 = arith.mulf %83, %87 : vector<8x32xf32>
    %89 = vector.broadcast %69 : vector<1x32xf32> to vector<8x32xf32>
    %90 = arith.mulf %88, %89 : vector<8x32xf32>
    %91 = vector.broadcast %70 : vector<1x32xf32> to vector<8x32xf32>
    %92 = arith.addf %90, %91 : vector<8x32xf32>
    %93 = vector.broadcast %1 : i32 to vector<8x1xi32>
    %94 = arith.cmpi slt, %10, %93 : vector<8x1xi32>
    %95 = arith.extui %94 : vector<8x1xi1> to vector<8x1xi32>
    %96 = arith.sitofp %95 : vector<8x1xi32> to vector<8x1xf32>
    %97 = vector.broadcast %96 : vector<8x1xf32> to vector<8x32xf32>
    %98 = arith.mulf %92, %97 : vector<8x32xf32>
    %99 = arith.truncf %98 : vector<8x32xf32> to vector<8x32xbf16>
    %c0_32 = arith.constant 0 : index
    %c0_33 = arith.constant 0 : index
    %c0_34 = arith.constant 0 : index
    %100 = vector.load %arg9[%c0_32, %c0_33, %c0_34] : memref<1x8x32xbf16, #tpu.memory_space<vmem>>, vector<1x8x32xbf16>
    %101 = vector.shape_cast %100 : vector<1x8x32xbf16> to vector<8x32xbf16>
    %102 = vector.shape_cast %99 : vector<8x32xbf16> to vector<1x8x32xbf16>
    tpu.vector_store %arg9[%c0_32, %c0_33, %c0_34], %102 {strides = array<i32>} : memref<1x8x32xbf16, #tpu.memory_space<vmem>>, vector<1x8x32xbf16>,
    return
  }
  func.func @transform_0(%arg0: i32, %arg1: memref<2xi32, #tpu.memory_space<smem>>) -> (i32, i32, i32) {
    %c0_i32 = arith.constant 0 : i32
    %c0_i32_0 = arith.constant 0 : i32
    %c0_i32_1 = arith.constant 0 : i32
    return %arg0, %c0_i32, %c0_i32_0 : i32, i32, i32
  }
  func.func @transform_1(%arg0: i32, %arg1: memref<2xi32, #tpu.memory_space<smem>>) -> (i32, i32) {
    %c0_i32 = arith.constant 0 : i32
    %c0_i32_0 = arith.constant 0 : i32
    %c0_i32_1 = arith.constant 0 : i32
    return %c0_i32, %c0_i32_0 : i32, i32
  }
  func.func @transform_2(%arg0: i32, %arg1: memref<2xi32, #tpu.memory_space<smem>>) -> (i32, i32) {
    %c0_i32 = arith.constant 0 : i32
    %c0_i32_0 = arith.constant 0 : i32
    %c0_i32_1 = arith.constant 0 : i32
    return %c0_i32, %c0_i32_0 : i32, i32
  }
  func.func @transform_3(%arg0: i32, %arg1: memref<2xi32, #tpu.memory_space<smem>>) -> (i32, i32) {
    %c0_i32 = arith.constant 0 : i32
    %c0_i32_0 = arith.constant 0 : i32
    %c0_i32_1 = arith.constant 0 : i32
    return %c0_i32, %c0_i32_0 : i32, i32
  }
  func.func @transform_4(%arg0: i32, %arg1: memref<2xi32, #tpu.memory_space<smem>>) -> (i32, i32) {
    %c0_i32 = arith.constant 0 : i32
    %c0_i32_0 = arith.constant 0 : i32
    %c0_i32_1 = arith.constant 0 : i32
    return %c0_i32, %c0_i32_0 : i32, i32
  }
  func.func @transform_5(%arg0: i32, %arg1: memref<2xi32, #tpu.memory_space<smem>>) -> (i32, i32) {
    %c0_i32 = arith.constant 0 : i32
    %c0_i32_0 = arith.constant 0 : i32
    %c0_i32_1 = arith.constant 0 : i32
    return %c0_i32, %c0_i32_0 : i32, i32
  }
  func.func @transform_6(%arg0: i32, %arg1: memref<2xi32, #tpu.memory_space<smem>>) -> (i32, i32) {
    %c0_i32 = arith.constant 0 : i32
    %c0_i32_0 = arith.constant 0 : i32
    %c0_i32_1 = arith.constant 0 : i32
    return %c0_i32, %c0_i32_0 : i32, i32
  }
  func.func @transform_7(%arg0: i32, %arg1: memref<2xi32, #tpu.memory_space<smem>>) -> (i32, i32, i32) {
    %c0_i32 = arith.constant 0 : i32
    %c0_i32_0 = arith.constant 0 : i32
    %c0_i32_1 = arith.constant 0 : i32
    return %arg0, %c0_i32, %c0_i32_0 : i32, i32, i32
  }
}

</mosaic_0001>

<bundles_post_ra>
// kernel: tpu_custom_call.1
= control target key start
LH: loop header
LB: loop body
LE: loop exit
PB: predicated region body
PF: predicated region fallthrough
CT: control target
= control target key end

     0   :  { %s1183_s27 = smov [#allocation3]   ;;  %s1482_s0 = inlined_call_operand.hbm [shape: s32[2], index: 0, kind: input, shape index: {}]   ;;  %s1483_s1 = inlined_call_operand.hbm [shape: bf16[2,8,32], index: 1, kind: input, shape index: {}]   ;;  %s1484_s2 = inlined_call_operand.hbm [shape: bf16[32,96], index: 2, kind: input, shape index: {}]   ;;  %s1485_s3 = inlined_call_operand.vmem [shape: f32[1,96], index: 3, kind: input, shape index: {}]   ;;  %s1486_s4 = inlined_call_operand.hbm [shape: bf16[32,32], index: 4, kind: input, shape index: {}]   ;;  %s1487_s5 = inlined_call_operand.vmem [shape: f32[1,32], index: 5, kind: input, shape index: {}]   ;;  %s1488_s6 = inlined_call_operand.vmem [shape: f32[1,32], index: 6, kind: input, shape index: {}]   ;;  %s1489_s7 = inlined_call_operand.vmem [shape: f32[1,32], index: 7, kind: input, shape index: {}]   ;;  %s1490_s8 = inlined_call_operand.hbm [shape: bf16[2,8,32], index: 8, kind: output, shape index: {}]  }
   0x1   :  { %1495 = sst [smem:[#allocation15_spill]] %s1484_s2 }
   0x2   :  { %1496 = sst [smem:[#allocation16_spill]] %s1486_s4 }
   0x3   :  { %14 = dma.hbm_to_smem %s1482_s0, 16, %s1183_s27, [#allocation2] }
   0x4   :  { %1153 = dma.done.wait [#allocation2], 16 }
   0x5   :  { %1154 = vsyncadd [#allocation2], 4294967280 }
   0x6   :  { %16 = sfence }
   0x7   :  { %17 = vsyncpa [#allocation5], 0 }
   0x8   :  { %19 = vsyncpa [#allocation5 + $0x1], 0 }
   0x9   :  { %20 = vsyncpa [#allocation8], 0 }
   0xa   :  { %21 = vsyncpa [#allocation6], 0 }
   0xb   :  { %23 = vsyncpa [#allocation6 + $0x1], 0  ;;  %s1246_s30 = smov 0   ;;  %s1248_s9 = smov 0  }
   0xc   :  { %s1250_s10 = smov 0   ;;  %s1252_s11 = smov 0  }
   0xd LB: > { %s1267_s0 = sadd.s32 4294967295, %s1181_s11   ;;  %s846_s12 = sadd.s32 4294967294, %s1181_s11   ;;  %s1181_s11 = sphi %s1252_s11, %s1518_s11   ;;  %s1177_s10 = sphi %s1250_s10, %s1517_s10   ;;  %s1173_s9 = sphi %s1248_s9, %s1516_s9   ;;  %s1169_s30 = sphi %s1246_s30, %s1515_s30  }
   0xe   : > { %p49_p0 = scmp.ne.s32.totalorder %s1173_s9, %s1169_s30  ;;  %p1491_p1 = scmp.eq.s32.totalorder %s1267_s0, 0 }
   0xf   : > { %p205_p3 = scmp.eq.s32.totalorder %s846_s12, 1  ;;  %p847_p5 = scmp.ge.s32.totalorder %s1181_s11, 1 }
  0x10   : > { %p1276_p4 = por %p1491_p1, %p49_p0  ;;  %p212_p7 = scmp.lt.s32.totalorder %s1181_s11, 3 }
  0x11   : > { %p1281_p6 = por %p205_p3, %p49_p0  ;;  %s1184_s16 = smov [#allocation7]  }
  0x12   : > { %s1497_s13 = scalar_select %p1276_p4, 1, 0 }
  0x13   : > { %s1498_s14 = scalar_select %p1281_p6, 1, 0 }
  0x14   : > { %p1286_p8 = pnand %p847_p5, %p212_p7  ;;  %s224_s17 = sshll.u32 %s1184_s16, 4  ;;  %s225_s17 = int_to_ptr.vmem [resolvable:$true] %s224_s17 }
  0x15   : > { %s1185_s19 = smov [#allocation9]   ;;  %s1042_s21 = scalar_lea.vmem %s225_s17, 256 }
  0x16   : > { %s1499_s15 = scalar_select %p1286_p8, 1, 0 }
  0x17   : > { %p943_p9 = pneg %p1286_p8  ;;  %s240_s20 = sshll.u32 %s1185_s19, 4  ;;  %s241_s20 = int_to_ptr.vmem [resolvable:$true] %s240_s20 }
  0x18   : > { %p1043_p13 = scmp.ne.s32.totalorder %s225_s17, %s1042_s21  ;;  %p1050_p5 = scmp.lt.s32.totalorder %s225_s17, %s225_s17 }
  0x19   : > { %p1295_p11 = pnand %p943_p9, %p1491_p1  ;;  %p1051_p7 = scmp.lt.s32.totalorder %s1042_s21, %s1042_s21 }
  0x1b   : > { %p1033_p12 = pneg %p1295_p11  ;;  %p1052_p10 = por %p1051_p7, %p1050_p5 }
  0x1d   : > { %p1045_p0 = pnand %p1043_p13, %p1033_p12 }
  0x1f   : > { %p1046_p3 = pneg %p1045_p0 }
  0x21   : > { %p1053_p9 = pnand %p1052_p10, %p1046_p3 }
  0x23   : > { %1056 = shalt.err (!%p1053_p9)
}
  0x24   : > { %s1186_s22 = smov 64   ;;  %s1187_s23 = smov 4  }
  0x25   : > { %s1501_s2 = sld [smem:[#allocation15_spill]]  ;;  %s1068_s26 = scalar_lea.vmem %s241_s20, 256 }
  0x26   : > { %p1069_p1 = scmp.ne.s32.totalorder %s241_s20, %s1068_s26  ;;  %p1076_p2 = scmp.lt.s32.totalorder %s241_s20, %s241_s20 }
  0x27   : > { %p1077_p6 = scmp.lt.s32.totalorder %s1068_s26, %s1068_s26 }
  0x28   : > { %p1071_p13 = pnand %p1069_p1, %p1033_p12 }
  0x29   : > { %p1078_p5 = por %p1077_p6, %p1076_p2 }
  0x2a   : > { %p1072_p0 = pneg %p1071_p13 }
  0x2b   : > { %946 = dma.hbm_to_vmem [thread:$0]  (!%p1295_p11), %s1501_s2, 256, %s225_s17, [#allocation8], %s1186_s22, %s1186_s22, %s1187_s23  }
  0x2c   : > { %p1079_p10 = pnand %p1078_p5, %p1072_p0 }
  0x2e   : > { %1082 = shalt.err (!%p1079_p10)
}
  0x2f   : > { %s1502_s4 = sld [smem:[#allocation16_spill]]  ;;  %s1318_s29 = sadd.s32 1, %s1181_s11  }
  0x30   : > { %s36_s12 = sadd.s32 1, %s1177_s10  ;;  %s33_s16 = ssub.s32 %s1181_s11, %s1318_s29 }
  0x31   : > { %p43_p1 = scmp.ne.s32.totalorder %s1177_s10, %s1173_s9  ;;  %p34_p2 = scmp.eq.s32.totalorder %s33_s16, 0 }
  0x32   : > { %p44_p6 = scmp.eq.s32.totalorder %s1181_s11, 0  ;;  %p1503_p12 = scmp.eq.s32.totalorder %s1267_s0, 1 }
  0x33   : > { %p960_p7 = scmp.lt.s32.totalorder %s1181_s11, 2  ;;  %s263_s19 = sand.u32 1, %s1177_s10  }
  0x34   : > { %p1328_p3 = por %p1503_p12, %p43_p1  ;;  %p45_p9 = por %p44_p6, %p43_p1 }
  0x35   : > { %949 = dma.hbm_to_vmem [thread:$0]  (!%p1295_p11), %s1502_s4, 256, %s241_s20, [#allocation8], %s1186_s22, %s1186_s22, %s1187_s23  }
  0x36   : > { %s1504_s17 = scalar_select %p1328_p3, 1, 0 }
  0x37   : > { %s1334_s18 = scalar_select %p34_p2, %s1177_s10, %s36_s12  }
  0x38   : > { %s851_s21 = sshll.u32 %s263_s19, 2  ;;  %s852_s20 = sshll.u32 %s1181_s11, 6 }
  0x39   : > { %s1341_s24 = scalar_lea.hbm %s1483_s1, %s852_s20  ;;  %s267_s25 = scalar_lea.vmem [#allocation4], %s851_s21 }
  0x3a   : > { %s274_s26 = sshll.u32 %s267_s25, 4  ;;  %p1343_p11 = pnand %p960_p7, %p45_p9  ;;  %s275_s26 = int_to_ptr.vmem [resolvable:$true] %s274_s26 }
  0x3b   : > { %s264_s28 = scalar_lea.sflag [#allocation5], %s263_s19  ;;  %s1083_s12 = scalar_lea.hbm %s1341_s24, 64 }
  0x3c   : > { %p1084_p13 = scmp.ne.s32.totalorder %s1341_s24, %s1083_s12  ;;  %p1085_p0 = pneg %p1343_p11 }
  0x3d   : > { %s1088_s22 = scalar_lea.hbm %s1483_s1, 128  ;;  %p1089_p1 = scmp.lt.s32.totalorder %s1341_s24, %s1483_s1 }
  0x3e   : > { %p1086_p5 = pnand %p1085_p0, %p1084_p13  ;;  %p1090_p2 = scmp.lt.s32.totalorder %s1088_s22, %s1083_s12 }
  0x40   : > { %p1087_p10 = pneg %p1086_p5  ;;  %p1091_p6 = por %p1090_p2, %p1089_p1 }
  0x42   : > { %p1092_p12 = pnand %p1091_p6, %p1087_p10 }
  0x44   : > { %1095 = shalt.err (!%p1092_p12)
}
  0x45   : > { %s1096_s25 = scalar_lea.vmem %s275_s26, 64  ;;  %s1188_s19 = smov [#allocation4]  }
  0x46   : > { %p1097_p7 = scmp.ne.s32.totalorder %s275_s26, %s1096_s25  ;;  %s1101_s2 = sshll.u32 %s1188_s19, 4  ;;  %s1102_s2 = int_to_ptr.vmem [resolvable:$false] %s1101_s2 }
  0x47   : > { %s1103_s4 = scalar_lea.vmem %s1102_s2, 128  ;;  %p1104_p13 = scmp.lt.s32.totalorder %s275_s26, %s1102_s2 }
  0x48   : > { %p1099_p9 = pnand %p1097_p7, %p1085_p0  ;;  %p1105_p5 = scmp.lt.s32.totalorder %s1103_s4, %s1096_s25 }
  0x4a   : > { %p1100_p3 = pneg %p1099_p9  ;;  %p1106_p4 = por %p1105_p5, %p1104_p13 }
  0x4c   : > { %p1107_p8 = pnand %p1106_p4, %p1100_p3 }
  0x4e   : > { %1110 = shalt.err (!%p1107_p8)
}
  0x4f   : > { %953 = dma.hbm_to_vmem [thread:$0]  (!%p1343_p11), %s1341_s24, 64, %s275_s26, %s264_s28  }
  0x50   : > { %p1506_p10 = scmp.ne.s32.totalorder %s1499_s15, 0 }
  0x51   : > { %s1364_s12 = sand.u32 (!%p1506_p10), 1, %s1173_s9   ;;  %p1507_p4 = scmp.ne.s32.totalorder (!%p1506_p10), %s1497_s13, 0 }
  0x52   : > { %283 = sbr.rel (%p1506_p10) target bundleno = 1772 (0x6ec), region = 48  ;;  %s854_s16 = sshll.u32 (!%p1506_p10), %s1364_s12, 2 }
  0x53   : > { %s286_s2 = scalar_lea.sflag (!%p1506_p10), [#allocation5], %s1364_s12  ;;  %s289_s4 = scalar_lea.vmem (!%p1506_p10), [#allocation4], %s854_s16 }
  0x57   : > { %1156 = dma.done.wait (%p1507_p4), %s286_s2, 64  }
  0x58   : > { %1158 = vsyncadd (%p1507_p4), %s286_s2, 4294967232  ;;  %p1508_p8 = scmp.eq.s32.totalorder %s1267_s0, 0 }
  0x5a   : > { %1160 = dma.done.wait (%p1508_p8), [#allocation8], 512   ;;  %p1509_p3 = pmov %p1508_p8 }
  0x5b   : > { %v1189_v0 = vmov 0.0   ;;  %vm1190_vm0 = vmmov 0   ;;  %v1009_v1 = vld [vmem:[#allocation7 + $0x8] sm:$0xff]   ;;  %v1010_v2 = vld [vmem:[#allocation7] sm:$0xff]   ;;  %v1385_v3 = vld [vmem:[%s289_s4] sm:$0xf]  ;;  %v398_v16 = vlaneseq }
  0x5c   : > { %1162 = vsyncadd (%p1509_p3), [#allocation8], 4294966784  ;;  %891 = vmatprep.subr.bf16.mxu0 %v1189_v0  ;;  %895 = vmatprep.mubr.msk.bf16.mxu0 %vm1190_vm0, %v1189_v0  ;;  %vm354_vm1 = vcmask 261120   ;;  %v858_v4 = vld [vmem:[%s1485_s3] ss:$0 sm:$0xff]  ;;  %s1191_s24 = smov 112  }
  0x5d   : > { %899 = vmatprep.subr.bf16.mxu1 %v1189_v0  ;;  %901 = vmatprep.mubr.msk.bf16.mxu1 %vm1190_vm0, %v1189_v0  ;;  %s1192_s26 = smov 96   ;;  %s1193_s27 = smov 80   ;;  %vm406_vm2 = vcmask 130048   ;;  %v401_v17 = vshrl.u32 %v398_v16, 7  ;;  %v399_v20 = vand.u32 127, %v398_v16  ;;  %vm457_vm5 = vcmask 64512  }
  0x5e   : > { %892 = vmatpush3.bf16.msra.mxu0 %v1009_v1  ;;  %s329_s28 = sld [smem:[#allocation3 + %s1267_s0]]  ;;  %s1194_s20 = smov 64   ;;  %vm475_vm6 = vcmask 1043456   ;;  %v1011_v57 = vld [vmem:[#allocation9 + $0x8] sm:$0xff]   ;;  %v1012_v58 = vld [vmem:[#allocation9] sm:$0xff]   ;;  %vm741_vm7 = vcmask 257024  }
  0x5f   : > { %893 = vmatprep.subr.bf16.mxu0 %v1189_v0  ;;  %s1195_s22 = smov 48   ;;  %s1196_s23 = smov 16  }
  0x60   : > { %s874_s15 = sshll.u32 %s1267_s0, 6  ;;  %p1512_p0 = scmp.ne.s32.totalorder %s1504_s17, 0 }
  0x61   : > { %s1197_s21 = smov [#allocation10]  }
  0x62   : > { %894 = vmatpush3.bf16.msra.mxu0 %v1010_v2  ;;  %s1115_s0 = sshll.u32 %s1197_s21, 4  ;;  %s1116_s0 = int_to_ptr.vmem [resolvable:$false] %s1115_s0 }
  0x63   : > { %905 = vmatprep.subr.bf16.mxu0 %v1189_v0 }
  0x64   : > { %v454_v18 = vstv %s329_s28 }
  0x65   : > { %896 = vmatmul.mubr.msk.bf16.vlgmr.msra.gmra.mxu0 %vm354_vm1, %v1385_v3  ;;  %vm1412_vm3 = vcmp.lt.s32.totalorder %v401_v17, %v454_v18  ;;  %vm455_vm4 = vcmp.ge.s32.totalorder %v399_v20, %v454_v18 }
  0x66   : > { %907 = vmatprep.mubr.msk.bf16.mxu0 %vm1190_vm0, %v1189_v0 }
 0x125   : > { %v392_v5 = vpop.f32.mrf.mxu0 }
 0x126   : > { %v393_v6 = vadd.f32 %v858_v4, %v392_v5 }
 0x127   : > { %v897_v7 = vpop.f32.mrf.mxu0 }
 0x128   : > { %v1395_v8 = vpack.c.bf16 %v393_v6, %v393_v6 }
 0x129   : > { %v395_v9 = vpop.f32.mrf.mxu0 }
 0x12a   : > { %520 = vrot.lane.b32.xlu1 %v1395_v8, %s1191_s24  ;;  %404 = vrot.lane.b32.xlu0 %v1395_v8, %s1192_s26  ;;  %v866_v9 = vld [vmem:[%s1487_s5] ss:$0 sm:$0xff]  ;;  %s327_s24 = scalar_lea.vmem [#allocation10], %s854_s16  ;;  %s1117_s16 = scalar_lea.vmem %s1116_s0, 128 }
 0x12b   : > { %v898_v10 = vpop.f32.mrf.mxu0  ;;  %s757_s26 = sshll.u32 %s327_s24, 4  ;;  %s758_s26 = int_to_ptr.vmem [resolvable:$true] %s757_s26 }
 0x12c   : > { %v704_v10 = vunpack.c.l.bf16 %v1385_v3  ;;  %p1118_p6 = scmp.lt.s32.totalorder %s758_s26, %s1116_s0 }
 0x12e   : > { %522 = vrot.lane.b32.xlu0 %v1395_v8, %s1193_s27 }
 0x19c   : > { %v405_v11 = vpop.permute.xlu0 %404  ;;  %v521_v15 = vpop.permute.xlu1 %520 }
 0x19d   : > { %v411_v12 = vsel %vm406_vm2, %v405_v11, 0 }
 0x19e   : > { %900 = vmatpush3.bf16.xpose.msra.mxu1 %v411_v12 }
 0x19f   : > { %911 = vmatprep.subr.bf16.mxu1 %v1189_v0 }
 0x1a0   : > { %v523_v13 = vpop.permute.xlu0 %522 }
 0x1a1   : > { %v528_v14 = vsel %vm406_vm2, %v523_v13, 0 }
 0x1a5   : > { %902 = vmatmul.mubr.msk.bf16.vlgmr.msra.gmra.mxu1 %vm406_vm2, %v1395_v8 }
 0x1a6   : > { %912 = vmatpush3.bf16.xpose.msra.mxu1 %v528_v14  ;;  %913 = vmatprep.mubr.msk.bf16.mxu1 %vm1190_vm0, %v1189_v0 }
 0x1a7   : > { %923 = vmatprep.subr.bf16.mxu1 %v1189_v0 }
 0x1ad   : > { %914 = vmatmul.mubr.msk.bf16.vlgmr.msra.gmra.mxu1 %vm406_vm2, %v521_v15 }
 0x1ae   : > { %927 = vmatprep.mubr.msk.bf16.mxu1 %vm1190_vm0, %v1189_v0  ;;  %924 = vmatpush3.bf16.msra.mxu1 %v1011_v57 }
 0x1af   : > { %925 = vmatprep.subr.bf16.mxu1 %v1189_v0 }
 0x1b2   : > { %926 = vmatpush3.bf16.msra.mxu1 %v1012_v58 }
 0x265   : > { %v447_v21 = vpop.f32.mrf.mxu1 }
 0x266   : > { %v453_v22 = vmul.f32 0.25, %v447_v21 }
 0x267   : > { %v903_v23 = vpop.f32.mrf.mxu1 }
 0x268   : > { %v456_v24 = vsel %vm455_vm4, -1e+30, %v453_v22 }
 0x269   : > { %v450_v25 = vpop.f32.mrf.mxu1  ;;  %v458_v26 = vsel %vm457_vm5, %v456_v24, -inf }
 0x26a   : > { %459 = vmax.xlane.f32.xlu1 %v458_v26 }
 0x26b   : > { %v904_v27 = vpop.f32.mrf.mxu1 }
 0x26c   : > { %v870_v27 = vld [vmem:[%s1488_s6] ss:$0 sm:$0xff] }
 0x26d   : > { %v564_v28 = vpop.f32.mrf.mxu1 }
 0x26e   : > { %v570_v29 = vmul.f32 0.25, %v564_v28 }
 0x26f   : > { %v915_v30 = vpop.f32.mrf.mxu1 }
 0x270   : > { %v571_v31 = vsel %vm455_vm4, -1e+30, %v570_v29  ;;  %v871_v29 = vld [vmem:[%s1489_s7] ss:$0 sm:$0xff] }
 0x271   : > { %v567_v32 = vpop.f32.mrf.mxu1  ;;  %v572_v33 = vsel %vm457_vm5, %v571_v31, -inf }
 0x272   : > { %573 = vmax.xlane.f32.xlu0 %v572_v33 }
 0x273   : > { %v916_v34 = vpop.f32.mrf.mxu1 }
 0x2f3   : > { %v460_v35 = vpop.xlane.xlu1 %459 }
 0x2f4   : > { %v461_v36 = vsub.f32 %v456_v24, %v460_v35 }
 0x2f6   : > { %v462_v37 = vmul.f32 1.442695, %v461_v36 }
 0x2f8   : > { %1013 = vpow2.f32 %v462_v37 }
 0x2fb   : > { %v574_v38 = vpop.xlane.xlu0 %573 }
 0x2fc   : > { %v575_v39 = vsub.f32 %v571_v31, %v574_v38  ;;  %v872_v31 = vsel %vm1412_vm3, 1.0, %v1189_v0 }
 0x2fe   : > { %v576_v40 = vmul.f32 1.442695, %v575_v39 }
 0x300   : > { %1015 = vpow2.f32 %v576_v40 }
 0x305   : > { %v1014_v41 = vpop.eup %1013 }
 0x306   : > { %v464_v42 = vsel %vm457_vm5, %v1014_v41, 0.0 }
 0x307   : > { %465 = vadd.xlane.f32.xlu0 %v464_v42 }
 0x30d   : > { %v1016_v43 = vpop.eup %1015 }
 0x30e   : > { %v578_v44 = vsel %vm457_vm5, %v1016_v43, 0.0 }
 0x30f   : > { %579 = vadd.xlane.f32.xlu1 %v578_v44 }
 0x31d   : > { %470 = vrot.lane.b32.xlu0 %v1395_v8, %s1194_s20  ;;  %s755_s20 = scalar_lea.hbm %s1490_s8, %s874_s15 }
 0x320   : > { %584 = vrot.lane.b32.xlu1 %v1395_v8, %s1195_s22  ;;  %s744_s22 = scalar_lea.sflag [#allocation6], %s1364_s12 }
 0x390   : > { %v466_v45 = vpop.xlane.xlu0 %465 }
 0x391   : > { %1017 = vrcp.f32 %v466_v45 }
 0x394   : > { %v471_v46 = vpop.permute.xlu0 %470 }
 0x395   : > { %v477_v47 = vsel %vm475_vm6, %v471_v46, 0 }
 0x396   : > { %906 = vmatpush3.bf16.msra.mxu0 %v477_v47 }
 0x397   : > { %917 = vmatprep.subr.bf16.mxu0 %v1189_v0 }
 0x398   : > { %v580_v48 = vpop.xlane.xlu1 %579 }
 0x399   : > { %1019 = vrcp.f32 %v580_v48 }
 0x39c   : > { %v585_v51 = vpop.permute.xlu1 %584 }
 0x39d   : > { %v590_v53 = vsel %vm475_vm6, %v585_v51, 0 }
 0x39e   : > { %v1018_v49 = vpop.eup %1017 }
 0x39f   : > { %v468_v50 = vmul.f32 %v1018_v49, %v1014_v41 }
 0x3a1   : > { %v469_v52 = vpack.c.bf16 %v468_v50, %v468_v50 }
 0x3a3   : > { %908 = vmatmul.mubr.msk.bf16.vlgmr.msra.gmra.mxu0 %vm457_vm5, %v469_v52 }
 0x3a4   : > { %918 = vmatpush3.bf16.msra.mxu0 %v590_v53  ;;  %919 = vmatprep.mubr.msk.bf16.mxu0 %vm1190_vm0, %v1189_v0 }
 0x3a6   : > { %v1020_v54 = vpop.eup %1019 }
 0x3a7   : > { %v582_v55 = vmul.f32 %v1020_v54, %v1016_v43 }
 0x3a9   : > { %v583_v56 = vpack.c.bf16 %v582_v55, %v582_v55 }
 0x3ab   : > { %920 = vmatmul.mubr.msk.bf16.vlgmr.msra.gmra.mxu0 %vm457_vm5, %v583_v56 }
 0x463   : > { %v513_v59 = vpop.f32.mrf.mxu0 }
 0x464   : > { %v519_v6 = vpack.c.bf16 %v513_v59, %v513_v59 }
 0x465   : > { %v909_v60 = vpop.f32.mrf.mxu0 }
 0x467   : > { %v516_v61 = vpop.f32.mrf.mxu0 }
 0x469   : > { %v910_v62 = vpop.f32.mrf.mxu0 }
 0x46b   : > { %v626_v63 = vpop.f32.mrf.mxu0 }
 0x46c   : > { %v632_v1 = vpack.c.bf16 %v626_v63, %v626_v63 }
 0x46d   : > { %v921_v2 = vpop.f32.mrf.mxu0 }
 0x46e   : > { %634 = vrot.lane.b32.xlu1 %v632_v1, %s1196_s23  ;;  %s1111_s23 = scalar_lea.vmem %s758_s26, 64 }
 0x46f   : > { %v629_v4 = vpop.f32.mrf.mxu0  ;;  %p1112_p11 = scmp.ne.s32.totalorder %s758_s26, %s1111_s23  ;;  %p1119_p12 = scmp.lt.s32.totalorder %s1117_s16, %s1111_s23 }
 0x471   : > { %v922_v5 = vpop.f32.mrf.mxu0  ;;  %p1113_p1 = pnand %p1112_p11, %p1512_p0  ;;  %p1120_p7 = por %p1119_p12, %p1118_p6 }
 0x473   : > { %p1114_p2 = pneg %p1113_p1 }
 0x475   : > { %p1121_p9 = pnand %p1120_p7, %p1114_p2 }
 0x4e0   : > { %v635_v7 = vpop.permute.xlu1 %634 }
 0x4e1   : > { %v638_v8 = vsel %vm406_vm2, %v519_v6, %v635_v7 }
 0x4e2   : > { %928 = vmatmul.mubr.msk.bf16.vlgmr.msra.gmra.mxu1 %vm354_vm1, %v638_v8 }
 0x5a2   : > { %v698_v11 = vpop.f32.mrf.mxu1 }
 0x5a3   : > { %v699_v12 = vadd.f32 %v866_v9, %v698_v11 }
 0x5a4   : > { %v929_v13 = vpop.f32.mrf.mxu1 }
 0x5a5   : > { %v705_v14 = vadd.f32 %v704_v10, %v699_v12 }
 0x5a6   : > { %v701_v15 = vpop.f32.mrf.mxu1 }
 0x5a7   : > { %v708_v16 = vsel %vm354_vm1, %v705_v14, 0.0 }
 0x5a8   : > { %709 = vadd.xlane.f32.xlu0 %v708_v16  ;;  %v930_v17 = vpop.f32.mrf.mxu1 }
 0x631   : > { %v710_v18 = vpop.xlane.xlu0 %709 }
 0x632   : > { %v712_v20 = vmul.f32 0.03125, %v710_v18 }
 0x634   : > { %v713_v21 = vsub.f32 %v705_v14, %v712_v20 }
 0x636   : > { %v714_v22 = vmul.f32 %v713_v21, %v713_v21 }
 0x638   : > { %v715_v23 = vsel %vm354_vm1, %v714_v22, 0.0 }
 0x639   : > { %716 = vadd.xlane.f32.xlu1 %v715_v23 }
 0x6c2   : > { %v717_v24 = vpop.xlane.xlu1 %716 }
 0x6c3   : > { %v718_v3 = vmul.f32 0.03125, %v717_v24 }
 0x6c5   : > { %v719_v25 = vadd.f32 1e-05, %v718_v3 }
 0x6c7   : > { %1021 = vrsqrt.f32 %v719_v25 }
 0x6d4   : > { %v1022_v26 = vpop.eup %1021 }
 0x6d5   : > { %v721_v28 = vmul.f32 %v1022_v26, %v713_v21 }
 0x6d7   : > { %v728_v30 = vmul.f32 %v870_v27, %v721_v28 }
 0x6d9   : > { %v735_v32 = vadd.f32 %v871_v29, %v728_v30 }
 0x6db   : > { %v739_v33 = vmul.f32 %v872_v31, %v735_v32 }
 0x6dd   : > { %v740_v34 = vpack.c.bf16 %v739_v33, %v739_v33 }
 0x6df   : > { %742 = vst.msk [vmem:[%s327_s24] sm:$0xf] %vm741_vm7, %v740_v34 }
 0x6e0   : > { %1124 = shalt.err (!%p1121_p9)
}
 0x6e1   : > { %s1125_s25 = scalar_lea.hbm %s755_s20, 64  ;;  %s1129_s2 = scalar_lea.hbm %s1490_s8, 128 }
 0x6e2   : > { %p1126_p13 = scmp.ne.s32.totalorder %s755_s20, %s1125_s25  ;;  %p1130_p4 = scmp.lt.s32.totalorder %s755_s20, %s1490_s8 }
 0x6e3   : > { %p1131_p8 = scmp.lt.s32.totalorder %s1129_s2, %s1125_s25 }
 0x6e4   : > { %p1127_p5 = pnand %p1126_p13, %p1512_p0 }
 0x6e5   : > { %p1132_p3 = por %p1131_p8, %p1130_p4 }
 0x6e6   : > { %p1128_p10 = pneg %p1127_p5 }
 0x6e8   : > { %p1133_p11 = pnand %p1132_p3, %p1128_p10 }
 0x6ea   : > { %1136 = shalt.err (!%p1133_p11)
}
 0x6eb   : > { %941 = dma.vmem_to_hbm [thread:$0]  (%p1512_p0), %s758_s26, 64, %s755_s20, %s744_s22  }
 0x6ec PF: > { %s769_s15 = sand.u32 1, %s1169_s30   ;;  %p1513_p1 = scmp.ne.s32.totalorder %s1498_s14, 0 }
 0x6ed   : > { %p1514_p2 = scmp.ge.s32.totalorder %s1181_s11, 2  ;;  %s770_s24 = scalar_lea.sflag [#allocation6], %s769_s15 }
 0x6ef   : > { %p955_p6 = pnand %p1514_p2, %p1513_p1 }
 0x6f1   : > { %p956_p12 = pneg %p955_p6 }
 0x6f3   : > { %1164 = dma.done.wait (%p956_p12), %s770_s24, 64  }
 0x6f4   : > { %1166 = vsyncadd (%p956_p12), %s770_s24, 4294967232  ;;  %p26_p7 = scmp.ge.s32.totalorder %s1318_s29, 4   ;;  %s1515_s30 = smov %s1173_s9 }
 0x6f5   : > { %s1516_s9 = smov %s1177_s10  ;;  %s1517_s10 = smov %s1334_s18 }
 0x6f6   : > { %s1518_s11 = smov %s1318_s29  ;;  %28 = sbr.rel (!%p26_p7) target bundleno = 13 (0xd), region = 101 }
 0x6fb   :  { %775 = vsyncpa [#allocation5], 1 }
 0x6fc   :  { %777 = vsyncpa [#allocation5 + $0x1], 1 }
 0x6fd   :  { %778 = vsyncpa [#allocation8], 1 }
 0x6fe   :  { %779 = vsyncpa [#allocation6], 1 }
 0x6ff   :  { %781 = vsyncpa [#allocation6 + $0x1], 1 }

</bundles_post_ra>
